<compile_context>
chip_gen: v5e
topology: v5e:2x2
jax: 0.10.0
libtpu: 0.0.40
codegen_flags: <defaults>
</compile_context>

<pallas_src>
import functools

import jax
import jax.numpy as jnp
from jax import lax
from jax.experimental import pallas as pl
from jax.experimental.pallas import tpu as pltpu


def _convblock_kernel(x_ref, p_ref, w1_ref, w3_ref, w4_ref, o_ref, *, H, W, seg):
    """Fused ConvBlock, channels-on-sublane / (batch*spatial)-on-lane layout.

    x_ref:  (Cin,  Nb*H*W) f32
    o_ref:  (Cout, Nb*H*W) f32
    p_ref:  (7*seg, 1) f32 packed [s1,t1,s2,t2',s3,t3',b4], each at an 8-aligned offset
            (b1 folded into t2', b3 folded into t3').
    w1_ref: (Cmid, Cin)      bf16   -- first 1x1 conv, channels-first
    w3_ref: (9, Cmid, Cmid)  bf16   -- 3x3 conv, [ky*3+kx, out, in]
    w4_ref: (Cout, Cmid)     bf16   -- final 1x1 conv
    """
    HW = H * W
    cin, nbhw = x_ref.shape
    cmid = w1_ref.shape[0]
    cout = w4_ref.shape[0]

    def param(j, c):
        return p_ref[pl.ds(j * seg, c), :]                 # (c, 1) f32, tile-aligned offset

    s1, t1 = param(0, cin), param(1, cin)
    s2, t2 = param(2, cmid), param(3, cmid)
    s3, t3 = param(4, cmid), param(5, cmid)
    b4 = param(6, cout)

    # ---- BN1 + ReLU (f32) -> 1x1 conv on MXU (bf16 operands, f32 accumulation) ----------
    h = jnp.maximum(x_ref[...] * s1 + t1, 0.0)
    h = jnp.dot(w1_ref[...], h.astype(jnp.bfloat16), preferred_element_type=jnp.float32)
    h = jnp.maximum(h * s2 + t2, 0.0)                      # (Cmid, nbhw) f32, b1 folded in t2

    # ---- per-image SAME-padding predicates (hoisted out of the 3x3 loop) ----------------
    idx = lax.broadcasted_iota(jnp.int32, (1, nbhw), 1)
    sidx = idx % HW                                        # spatial index within each image
    xpos = sidx % W
    has_up, has_down = sidx >= W, sidx < HW - W
    has_left, has_right = xpos >= 1, xpos < W - 1

    # ---- 3x3 conv: nine shifted+masked taps, each a (Cmid,Cmid)@(Cmid,nbhw) MXU dot, ----
    # ---- accumulated in f32 vregs (no tap scratch, no sub-tile stores).              ----
    acc = jnp.zeros((cmid, nbhw), jnp.float32)
    for ky in range(3):
        dy = ky - 1
        for kx in range(3):
            dx = kx - 1
            off = dy * W + dx
            tap = pltpu.roll(h, (-off) % nbhw, axis=1) if off != 0 else h
            conds = []
            if dy < 0:
                conds.append(has_up)
            if dy > 0:
                conds.append(has_down)
            if dx < 0:
                conds.append(has_left)
            if dx > 0:
                conds.append(has_right)
            if conds:
                m = conds[0]
                for c in conds[1:]:
                    m = jnp.logical_and(m, c)
                tap = jnp.where(m, tap, 0.0)
            acc = acc + jnp.dot(w3_ref[ky * 3 + kx], tap.astype(jnp.bfloat16),
                                preferred_element_type=jnp.float32)

    # ---- BN3 (+b3 folded) + ReLU -> final 1x1 conv + bias --------------------------------
    h = jnp.maximum(acc * s3 + t3, 0.0)
    o_ref[...] = jnp.dot(w4_ref[...], h.astype(jnp.bfloat16),
                         preferred_element_type=jnp.float32) + b4


def conv_block_forward(x_nchw, kp, *, batch_blocks=1):
    """Pallas implementation of ConvBlock.forward. Input/output are NCHW."""
    N, Cin, H, W = x_nchw.shape
    Cmid = kp["w1"].shape[0]
    Cout = kp["w4"].shape[0]
    HW = H * W
    assert N % batch_blocks == 0
    nbhw = (N // batch_blocks) * HW          # lanes per grid step (multiple of 128 here)

    # NCHW -> (Cin, N*H*W): channels on sublanes, batch*spatial on lanes (tiny XLA transpose).
    x2 = jnp.transpose(x_nchw.reshape(N, Cin, HW), (1, 0, 2)).reshape(Cin, N * HW)
    x2 = x2.astype(jnp.float32)

    def resident(a):
        nd = a.ndim
        return pl.BlockSpec(a.shape, lambda b, _nd=nd: (0,) * _nd)

    y = pl.pallas_call(
        functools.partial(_convblock_kernel, H=H, W=W, seg=kp["seg"]),
        out_shape=jax.ShapeDtypeStruct((Cout, N * HW), jnp.float32),
        grid=(batch_blocks,),
        in_specs=[
            pl.BlockSpec((Cin, nbhw), lambda b: (0, b)),
            resident(kp["p"]),
            resident(kp["w1"]),
            resident(kp["w3"]),
            resident(kp["w4"]),
        ],
        out_specs=pl.BlockSpec((Cout, nbhw), lambda b: (0, b)),
        compiler_params=pltpu.CompilerParams(
            # "parallel" lets v7x shard batch_blocks>=2 across its 2 TensorCores;
            # no-op on single-TC v5e/v6e where batch_blocks=1 (full fold) is best.
            dimension_semantics=("parallel",),
            vmem_limit_bytes=32 * 1024 * 1024,
        ),
    )(x2, kp["p"], kp["w1"], kp["w3"], kp["w4"])

    return jnp.transpose(y.reshape(Cout, N, HW), (1, 0, 2)).reshape(N, Cout, H, W)


# ---------------------------------------------------------------------------
# Parameters: synthetic BN/conv params (natural layouts) + kernel-ready prep.
# ---------------------------------------------------------------------------
def _fold_bn(kg, kb, km, kv, c, eps=1e-5):
    gamma = 1.0 + 0.1 * jax.random.normal(kg, (c,), jnp.float32)
    beta = 0.1 * jax.random.normal(kb, (c,), jnp.float32)
    mean = 0.1 * jax.random.normal(km, (c,), jnp.float32)
    var = jax.random.uniform(kv, (c,), jnp.float32, 0.5, 1.5)
    scale = gamma / jnp.sqrt(var + eps)
    shift = beta - mean * scale
    return scale, shift


def init_params(key, in_channels, out_channels):
    """Deterministic synthetic parameters matching ConvBlock's layer shapes."""
    cmid = out_channels // 2
    ks = list(jax.random.split(key, 18))
    s1, t1 = _fold_bn(ks[0], ks[1], ks[2], ks[3], in_channels)
    s2, t2 = _fold_bn(ks[4], ks[5], ks[6], ks[7], cmid)
    s3, t3 = _fold_bn(ks[8], ks[9], ks[10], ks[11], cmid)
    w1 = 0.3 * jax.random.normal(ks[12], (in_channels, cmid), jnp.float32)   # 1x1 (Cin, Cmid)
    b1 = 0.05 * jax.random.normal(ks[13], (cmid,), jnp.float32)
    w3 = 0.2 * jax.random.normal(ks[14], (3, 3, cmid, cmid), jnp.float32)    # 3x3 HWIO
    b3 = 0.05 * jax.random.normal(ks[15], (cmid,), jnp.float32)
    w4 = 0.3 * jax.random.normal(ks[16], (cmid, out_channels), jnp.float32)  # 1x1 (Cmid, Cout)
    b4 = 0.05 * jax.random.normal(ks[17], (out_channels,), jnp.float32)
    return dict(s1=s1, t1=t1, w1=w1, b1=b1, s2=s2, t2=t2,
                w3=w3, b3=b3, s3=s3, t3=t3, w4=w4, b4=b4)


def prepare_kernel_params(p):
    """Channels-first bf16 weights; BN scale/shift + b4 packed into one f32 column input."""
    cin, cmid = p["w1"].shape
    cout = p["w4"].shape[1]
    seg = 8 * ((max(cin, cmid, cout) + 7) // 8)            # per-segment sublane stride
    cols = [p["s1"], p["t1"],
            p["s2"], p["s2"] * p["b1"] + p["t2"],          # fold b1 into BN2 shift
            p["s3"], p["s3"] * p["b3"] + p["t3"],          # fold b3 into BN3 shift
            p["b4"]]
    packed = jnp.zeros((len(cols) * seg, 1), jnp.float32)
    for j, c in enumerate(cols):
        packed = packed.at[j * seg:j * seg + c.shape[0], 0].set(c)
    # 3x3 HWIO -> (9, Cmid_out, Cmid_in)
    w3k = jnp.transpose(p["w3"], (0, 1, 3, 2)).reshape(9, cmid, cmid)
    return dict(
        p=packed, seg=seg,
        w1=jnp.transpose(p["w1"]).astype(jnp.bfloat16),    # (Cmid, Cin)
        w3=w3k.astype(jnp.bfloat16),                       # (9, Cmid, Cmid)
        w4=jnp.transpose(p["w4"]).astype(jnp.bfloat16),    # (Cout, Cmid)
    )


def reference_forward(x_nchw, p):
    """Pure-JAX f32 reference (same folded-BN eval semantics, unfolded biases)."""
    x = jnp.transpose(x_nchw, (0, 2, 3, 1)).astype(jnp.float32)      # NHWC
    h = jnp.maximum(x * p["s1"] + p["t1"], 0.0)
    h = jnp.einsum("nhwc,co->nhwo", h, p["w1"]) + p["b1"]
    h = jnp.maximum(h * p["s2"] + p["t2"], 0.0)
    h = lax.conv_general_dilated(h, p["w3"], (1, 1), "SAME",
                                 dimension_numbers=("NHWC", "HWIO", "NHWC")) + p["b3"]
    h = jnp.maximum(h * p["s3"] + p["t3"], 0.0)
    h = jnp.einsum("nhwc,co->nhwo", h, p["w4"]) + p["b4"]
    return jnp.transpose(h, (0, 3, 1, 2))                            # NCHW


if __name__ == "__main__":
    key = jax.random.PRNGKey(0)
    k_x, k_p = jax.random.split(key)

    N, Cin, H, W = 2, 4, 16, 16
    Cout = 8

    x = jax.random.normal(k_x, (N, Cin, H, W), jnp.float32)          # NCHW, like PyTorch
    raw_params = init_params(k_p, Cin, Cout)
    kparams = prepare_kernel_params(raw_params)

    # batch_blocks=1 -> whole batch in one grid step (best on single-TC v5e/v6e);
    # on v7x with N>=2 use batch_blocks=2 so both TensorCores get N/2 images each.
    out = jax.block_until_ready(conv_block_forward(x, kparams, batch_blocks=1))
    ref = jax.block_until_ready(reference_forward(x, raw_params))

    assert out.shape == (N, Cout, H, W), out.shape
    # bf16 MXU operands (f32 accumulation) vs f32 reference -> relaxed tolerance.
    max_err = float(jnp.max(jnp.abs(out - ref)))
    assert jnp.allclose(out, ref, atol=5e-2, rtol=5e-2), max_err

    print("KERNEL_OK")
</pallas_src>

<mosaic_0001>
module attributes {stable_mosaic.version = 11 : i64} {
  func.func @_convblock_kernel(%arg0: i32, %arg1: memref<4x512xf32, #tpu.memory_space<vmem>>, %arg2: memref<56x1xf32, #tpu.memory_space<vmem>>, %arg3: memref<4x4xbf16, #tpu.memory_space<vmem>>, %arg4: memref<9x4x4xbf16, #tpu.memory_space<vmem>>, %arg5: memref<8x4xbf16, #tpu.memory_space<vmem>>, %arg6: memref<8x512xf32, #tpu.memory_space<vmem>>) attributes {dimension_semantics = [#tpu.dimension_semantics<parallel>], iteration_bounds = array<i64: 1>, scalar_prefetch = 0 : i64, scratch_operands = 0 : i64, tpu.core_type = #tpu.core_type<tc>, window_params = [{transform_indices = @transform_0, window_bounds = array<i64: 4, 512>}, {pipeline_mode = #tpu.pipeline_mode<synchronous>, transform_indices = @transform_1, window_bounds = array<i64: 56, 1>}, {pipeline_mode = #tpu.pipeline_mode<synchronous>, transform_indices = @transform_2, window_bounds = array<i64: 4, 4>}, {pipeline_mode = #tpu.pipeline_mode<synchronous>, transform_indices = @transform_3, window_bounds = array<i64: 9, 4, 4>}, {pipeline_mode = #tpu.pipeline_mode<synchronous>, transform_indices = @transform_4, window_bounds = array<i64: 8, 4>}, {transform_indices = @transform_5, window_bounds = array<i64: 8, 512>}]} {
    %c0 = arith.constant 0 : index
    %c0_0 = arith.constant 0 : index
    %0 = vector.load %arg2[%c0, %c0_0] : memref<56x1xf32, #tpu.memory_space<vmem>>, vector<4x1xf32>
    %c8 = arith.constant 8 : index
    %c0_1 = arith.constant 0 : index
    %1 = vector.load %arg2[%c8, %c0_1] : memref<56x1xf32, #tpu.memory_space<vmem>>, vector<4x1xf32>
    %c16 = arith.constant 16 : index
    %c0_2 = arith.constant 0 : index
    %2 = vector.load %arg2[%c16, %c0_2] : memref<56x1xf32, #tpu.memory_space<vmem>>, vector<4x1xf32>
    %c24 = arith.constant 24 : index
    %c0_3 = arith.constant 0 : index
    %3 = vector.load %arg2[%c24, %c0_3] : memref<56x1xf32, #tpu.memory_space<vmem>>, vector<4x1xf32>
    %c32 = arith.constant 32 : index
    %c0_4 = arith.constant 0 : index
    %4 = vector.load %arg2[%c32, %c0_4] : memref<56x1xf32, #tpu.memory_space<vmem>>, vector<4x1xf32>
    %c40 = arith.constant 40 : index
    %c0_5 = arith.constant 0 : index
    %5 = vector.load %arg2[%c40, %c0_5] : memref<56x1xf32, #tpu.memory_space<vmem>>, vector<4x1xf32>
    %c48 = arith.constant 48 : index
    %c0_6 = arith.constant 0 : index
    %6 = vector.load %arg2[%c48, %c0_6] : memref<56x1xf32, #tpu.memory_space<vmem>>, vector<8x1xf32>
    %c0_7 = arith.constant 0 : index
    %c0_8 = arith.constant 0 : index
    %7 = vector.load %arg1[%c0_7, %c0_8] : memref<4x512xf32, #tpu.memory_space<vmem>>, vector<4x512xf32>
    %8 = vector.broadcast %0 : vector<4x1xf32> to vector<4x512xf32>
    %9 = arith.mulf %7, %8 : vector<4x512xf32>
    %10 = vector.broadcast %1 : vector<4x1xf32> to vector<4x512xf32>
    %11 = arith.addf %9, %10 : vector<4x512xf32>
    %cst = arith.constant 0.000000e+00 : f32
    %12 = vector.broadcast %cst : f32 to vector<4x512xf32>
    %13 = arith.maximumf %11, %12 : vector<4x512xf32>
    %c0_9 = arith.constant 0 : index
    %c0_10 = arith.constant 0 : index
    %14 = vector.load %arg3[%c0_9, %c0_10] : memref<4x4xbf16, #tpu.memory_space<vmem>>, vector<4x4xbf16>
    %15 = arith.truncf %13 : vector<4x512xf32> to vector<4x512xbf16>
    %cst_11 = arith.constant dense<0.000000e+00> : vector<4x512xf32>
    %16 = tpu.matmul %14, %15, %cst_11 {dimension_numbers = #tpu.dot_dimension_numbers<[1], [0], [0], [1], [0, 0, 1, 1], [], []>} : vector<4x4xbf16>, vector<4x512xbf16>, vector<4x512xf32> -> vector<4x512xf32>
    %17 = vector.broadcast %2 : vector<4x1xf32> to vector<4x512xf32>
    %18 = arith.mulf %16, %17 : vector<4x512xf32>
    %19 = vector.broadcast %3 : vector<4x1xf32> to vector<4x512xf32>
    %20 = arith.addf %18, %19 : vector<4x512xf32>
    %cst_12 = arith.constant 0.000000e+00 : f32
    %21 = vector.broadcast %cst_12 : f32 to vector<4x512xf32>
    %22 = arith.maximumf %20, %21 : vector<4x512xf32>
    %23 = tpu.iota {dimensions = array<i32: 1>} : vector<1x512xi32>
    %c256_i32 = arith.constant 256 : i32
    %c0_i32 = arith.constant 0 : i32
    %24 = arith.cmpi eq, %c256_i32, %c0_i32 : i32
    %c1_i32 = arith.constant 1 : i32
    %25 = arith.select %24, %c1_i32, %c256_i32 : i32
    %26 = vector.broadcast %25 : i32 to vector<1x512xi32>
    %27 = arith.remsi %23, %26 : vector<1x512xi32>
    %c0_i32_13 = arith.constant 0 : i32
    %28 = vector.broadcast %c0_i32_13 : i32 to vector<1x512xi32>
    %29 = arith.cmpi ne, %27, %28 : vector<1x512xi32>
    %c0_i32_14 = arith.constant 0 : i32
    %30 = vector.broadcast %c0_i32_14 : i32 to vector<1x512xi32>
    %31 = arith.cmpi slt, %27, %30 : vector<1x512xi32>
    %c0_i32_15 = arith.constant 0 : i32
    %32 = arith.cmpi slt, %25, %c0_i32_15 : i32
    %33 = vector.broadcast %32 : i1 to vector<1x512xi1>
    %34 = vector.broadcast %33 : vector<1x512xi1> to vector<1x512xi1>
    %35 = arith.xori %31, %34 : vector<1x512xi1>
    %36 = arith.andi %35, %29 : vector<1x512xi1>
    %37 = vector.broadcast %25 : i32 to vector<1x512xi32>
    %38 = arith.addi %27, %37 : vector<1x512xi32>
    %39 = arith.select %36, %38, %27 : vector<1x512xi1>, vector<1x512xi32>
    %c16_i32 = arith.constant 16 : i32
    %c0_i32_16 = arith.constant 0 : i32
    %40 = arith.cmpi eq, %c16_i32, %c0_i32_16 : i32
    %c1_i32_17 = arith.constant 1 : i32
    %41 = arith.select %40, %c1_i32_17, %c16_i32 : i32
    %42 = vector.broadcast %41 : i32 to vector<1x512xi32>
    %43 = arith.remsi %39, %42 : vector<1x512xi32>
    %c0_i32_18 = arith.constant 0 : i32
    %44 = vector.broadcast %c0_i32_18 : i32 to vector<1x512xi32>
    %45 = arith.cmpi ne, %43, %44 : vector<1x512xi32>
    %c0_i32_19 = arith.constant 0 : i32
    %46 = vector.broadcast %c0_i32_19 : i32 to vector<1x512xi32>
    %47 = arith.cmpi slt, %43, %46 : vector<1x512xi32>
    %c0_i32_20 = arith.constant 0 : i32
    %48 = arith.cmpi slt, %41, %c0_i32_20 : i32
    %49 = vector.broadcast %48 : i1 to vector<1x512xi1>
    %50 = vector.broadcast %49 : vector<1x512xi1> to vector<1x512xi1>
    %51 = arith.xori %47, %50 : vector<1x512xi1>
    %52 = arith.andi %51, %45 : vector<1x512xi1>
    %53 = vector.broadcast %41 : i32 to vector<1x512xi32>
    %54 = arith.addi %43, %53 : vector<1x512xi32>
    %55 = arith.select %52, %54, %43 : vector<1x512xi1>, vector<1x512xi32>
    %c16_i32_21 = arith.constant 16 : i32
    %56 = vector.broadcast %c16_i32_21 : i32 to vector<1x512xi32>
    %57 = arith.cmpi sge, %39, %56 : vector<1x512xi32>
    %c240_i32 = arith.constant 240 : i32
    %58 = vector.broadcast %c240_i32 : i32 to vector<1x512xi32>
    %59 = arith.cmpi slt, %39, %58 : vector<1x512xi32>
    %c1_i32_22 = arith.constant 1 : i32
    %60 = vector.broadcast %c1_i32_22 : i32 to vector<1x512xi32>
    %61 = arith.cmpi sge, %55, %60 : vector<1x512xi32>
    %c15_i32 = arith.constant 15 : i32
    %62 = vector.broadcast %c15_i32 : i32 to vector<1x512xi32>
    %63 = arith.cmpi slt, %55, %62 : vector<1x512xi32>
    %cst_23 = arith.constant 0.000000e+00 : f32
    %64 = vector.broadcast %cst_23 : f32 to vector<4x512xf32>
    %c17_i32 = arith.constant 17 : i32
    %65 = tpu.dynamic_rotate %22 by %c17_i32 dim 1 : vector<4x512xf32>, i32 -> vector<4x512xf32>
    %66 = arith.andi %57, %61 : vector<1x512xi1>
    %cst_24 = arith.constant 0.000000e+00 : f32
    %67 = vector.shape_cast %66 : vector<1x512xi1> to vector<1x512xi1>
    %68 = vector.broadcast %67 : vector<1x512xi1> to vector<4x512xi1>
    %69 = vector.broadcast %cst_24 : f32 to vector<4x512xf32>
    %70 = arith.select %68, %65, %69 : vector<4x512xi1>, vector<4x512xf32>
    %c0_25 = arith.constant 0 : index
    %c0_26 = arith.constant 0 : index
    %c0_27 = arith.constant 0 : index
    %71 = vector.load %arg4[%c0_25, %c0_26, %c0_27] : memref<9x4x4xbf16, #tpu.memory_space<vmem>>, vector<1x4x4xbf16>
    %72 = vector.shape_cast %71 : vector<1x4x4xbf16> to vector<4x4xbf16>
    %73 = arith.truncf %70 : vector<4x512xf32> to vector<4x512xbf16>
    %cst_28 = arith.constant dense<0.000000e+00> : vector<4x512xf32>
    %74 = tpu.matmul %72, %73, %cst_28 {dimension_numbers = #tpu.dot_dimension_numbers<[1], [0], [0], [1], [0, 0, 1, 1], [], []>} : vector<4x4xbf16>, vector<4x512xbf16>, vector<4x512xf32> -> vector<4x512xf32>
    %75 = arith.addf %64, %74 : vector<4x512xf32>
    %c16_i32_29 = arith.constant 16 : i32
    %76 = tpu.dynamic_rotate %22 by %c16_i32_29 dim 1 : vector<4x512xf32>, i32 -> vector<4x512xf32>
    %cst_30 = arith.constant 0.000000e+00 : f32
    %77 = vector.shape_cast %57 : vector<1x512xi1> to vector<1x512xi1>
    %78 = vector.broadcast %77 : vector<1x512xi1> to vector<4x512xi1>
    %79 = vector.broadcast %cst_30 : f32 to vector<4x512xf32>
    %80 = arith.select %78, %76, %79 : vector<4x512xi1>, vector<4x512xf32>
    %c1 = arith.constant 1 : index
    %c0_31 = arith.constant 0 : index
    %c0_32 = arith.constant 0 : index
    %81 = vector.load %arg4[%c1, %c0_31, %c0_32] : memref<9x4x4xbf16, #tpu.memory_space<vmem>>, vector<1x4x4xbf16>
    %82 = vector.shape_cast %81 : vector<1x4x4xbf16> to vector<4x4xbf16>
    %83 = arith.truncf %80 : vector<4x512xf32> to vector<4x512xbf16>
    %cst_33 = arith.constant dense<0.000000e+00> : vector<4x512xf32>
    %84 = tpu.matmul %82, %83, %cst_33 {dimension_numbers = #tpu.dot_dimension_numbers<[1], [0], [0], [1], [0, 0, 1, 1], [], []>} : vector<4x4xbf16>, vector<4x512xbf16>, vector<4x512xf32> -> vector<4x512xf32>
    %85 = arith.addf %75, %84 : vector<4x512xf32>
    %c15_i32_34 = arith.constant 15 : i32
    %86 = tpu.dynamic_rotate %22 by %c15_i32_34 dim 1 : vector<4x512xf32>, i32 -> vector<4x512xf32>
    %87 = arith.andi %57, %63 : vector<1x512xi1>
    %cst_35 = arith.constant 0.000000e+00 : f32
    %88 = vector.shape_cast %87 : vector<1x512xi1> to vector<1x512xi1>
    %89 = vector.broadcast %88 : vector<1x512xi1> to vector<4x512xi1>
    %90 = vector.broadcast %cst_35 : f32 to vector<4x512xf32>
    %91 = arith.select %89, %86, %90 : vector<4x512xi1>, vector<4x512xf32>
    %c2 = arith.constant 2 : index
    %c0_36 = arith.constant 0 : index
    %c0_37 = arith.constant 0 : index
    %92 = vector.load %arg4[%c2, %c0_36, %c0_37] : memref<9x4x4xbf16, #tpu.memory_space<vmem>>, vector<1x4x4xbf16>
    %93 = vector.shape_cast %92 : vector<1x4x4xbf16> to vector<4x4xbf16>
    %94 = arith.truncf %91 : vector<4x512xf32> to vector<4x512xbf16>
    %cst_38 = arith.constant dense<0.000000e+00> : vector<4x512xf32>
    %95 = tpu.matmul %93, %94, %cst_38 {dimension_numbers = #tpu.dot_dimension_numbers<[1], [0], [0], [1], [0, 0, 1, 1], [], []>} : vector<4x4xbf16>, vector<4x512xbf16>, vector<4x512xf32> -> vector<4x512xf32>
    %96 = arith.addf %85, %95 : vector<4x512xf32>
    %c1_i32_39 = arith.constant 1 : i32
    %97 = tpu.dynamic_rotate %22 by %c1_i32_39 dim 1 : vector<4x512xf32>, i32 -> vector<4x512xf32>
    %cst_40 = arith.constant 0.000000e+00 : f32
    %98 = vector.shape_cast %61 : vector<1x512xi1> to vector<1x512xi1>
    %99 = vector.broadcast %98 : vector<1x512xi1> to vector<4x512xi1>
    %100 = vector.broadcast %cst_40 : f32 to vector<4x512xf32>
    %101 = arith.select %99, %97, %100 : vector<4x512xi1>, vector<4x512xf32>
    %c3 = arith.constant 3 : index
    %c0_41 = arith.constant 0 : index
    %c0_42 = arith.constant 0 : index
    %102 = vector.load %arg4[%c3, %c0_41, %c0_42] : memref<9x4x4xbf16, #tpu.memory_space<vmem>>, vector<1x4x4xbf16>
    %103 = vector.shape_cast %102 : vector<1x4x4xbf16> to vector<4x4xbf16>
    %104 = arith.truncf %101 : vector<4x512xf32> to vector<4x512xbf16>
    %cst_43 = arith.constant dense<0.000000e+00> : vector<4x512xf32>
    %105 = tpu.matmul %103, %104, %cst_43 {dimension_numbers = #tpu.dot_dimension_numbers<[1], [0], [0], [1], [0, 0, 1, 1], [], []>} : vector<4x4xbf16>, vector<4x512xbf16>, vector<4x512xf32> -> vector<4x512xf32>
    %106 = arith.addf %96, %105 : vector<4x512xf32>
    %c4 = arith.constant 4 : index
    %c0_44 = arith.constant 0 : index
    %c0_45 = arith.constant 0 : index
    %107 = vector.load %arg4[%c4, %c0_44, %c0_45] : memref<9x4x4xbf16, #tpu.memory_space<vmem>>, vector<1x4x4xbf16>
    %108 = vector.shape_cast %107 : vector<1x4x4xbf16> to vector<4x4xbf16>
    %109 = arith.truncf %22 : vector<4x512xf32> to vector<4x512xbf16>
    %cst_46 = arith.constant dense<0.000000e+00> : vector<4x512xf32>
    %110 = tpu.matmul %108, %109, %cst_46 {dimension_numbers = #tpu.dot_dimension_numbers<[1], [0], [0], [1], [0, 0, 1, 1], [], []>} : vector<4x4xbf16>, vector<4x512xbf16>, vector<4x512xf32> -> vector<4x512xf32>
    %111 = arith.addf %106, %110 : vector<4x512xf32>
    %c511_i32 = arith.constant 511 : i32
    %112 = tpu.dynamic_rotate %22 by %c511_i32 dim 1 : vector<4x512xf32>, i32 -> vector<4x512xf32>
    %cst_47 = arith.constant 0.000000e+00 : f32
    %113 = vector.shape_cast %63 : vector<1x512xi1> to vector<1x512xi1>
    %114 = vector.broadcast %113 : vector<1x512xi1> to vector<4x512xi1>
    %115 = vector.broadcast %cst_47 : f32 to vector<4x512xf32>
    %116 = arith.select %114, %112, %115 : vector<4x512xi1>, vector<4x512xf32>
    %c5 = arith.constant 5 : index
    %c0_48 = arith.constant 0 : index
    %c0_49 = arith.constant 0 : index
    %117 = vector.load %arg4[%c5, %c0_48, %c0_49] : memref<9x4x4xbf16, #tpu.memory_space<vmem>>, vector<1x4x4xbf16>
    %118 = vector.shape_cast %117 : vector<1x4x4xbf16> to vector<4x4xbf16>
    %119 = arith.truncf %116 : vector<4x512xf32> to vector<4x512xbf16>
    %cst_50 = arith.constant dense<0.000000e+00> : vector<4x512xf32>
    %120 = tpu.matmul %118, %119, %cst_50 {dimension_numbers = #tpu.dot_dimension_numbers<[1], [0], [0], [1], [0, 0, 1, 1], [], []>} : vector<4x4xbf16>, vector<4x512xbf16>, vector<4x512xf32> -> vector<4x512xf32>
    %121 = arith.addf %111, %120 : vector<4x512xf32>
    %c497_i32 = arith.constant 497 : i32
    %122 = tpu.dynamic_rotate %22 by %c497_i32 dim 1 : vector<4x512xf32>, i32 -> vector<4x512xf32>
    %123 = arith.andi %59, %61 : vector<1x512xi1>
    %cst_51 = arith.constant 0.000000e+00 : f32
    %124 = vector.shape_cast %123 : vector<1x512xi1> to vector<1x512xi1>
    %125 = vector.broadcast %124 : vector<1x512xi1> to vector<4x512xi1>
    %126 = vector.broadcast %cst_51 : f32 to vector<4x512xf32>
    %127 = arith.select %125, %122, %126 : vector<4x512xi1>, vector<4x512xf32>
    %c6 = arith.constant 6 : index
    %c0_52 = arith.constant 0 : index
    %c0_53 = arith.constant 0 : index
    %128 = vector.load %arg4[%c6, %c0_52, %c0_53] : memref<9x4x4xbf16, #tpu.memory_space<vmem>>, vector<1x4x4xbf16>
    %129 = vector.shape_cast %128 : vector<1x4x4xbf16> to vector<4x4xbf16>
    %130 = arith.truncf %127 : vector<4x512xf32> to vector<4x512xbf16>
    %cst_54 = arith.constant dense<0.000000e+00> : vector<4x512xf32>
    %131 = tpu.matmul %129, %130, %cst_54 {dimension_numbers = #tpu.dot_dimension_numbers<[1], [0], [0], [1], [0, 0, 1, 1], [], []>} : vector<4x4xbf16>, vector<4x512xbf16>, vector<4x512xf32> -> vector<4x512xf32>
    %132 = arith.addf %121, %131 : vector<4x512xf32>
    %c496_i32 = arith.constant 496 : i32
    %133 = tpu.dynamic_rotate %22 by %c496_i32 dim 1 : vector<4x512xf32>, i32 -> vector<4x512xf32>
    %cst_55 = arith.constant 0.000000e+00 : f32
    %134 = vector.shape_cast %59 : vector<1x512xi1> to vector<1x512xi1>
    %135 = vector.broadcast %134 : vector<1x512xi1> to vector<4x512xi1>
    %136 = vector.broadcast %cst_55 : f32 to vector<4x512xf32>
    %137 = arith.select %135, %133, %136 : vector<4x512xi1>, vector<4x512xf32>
    %c7 = arith.constant 7 : index
    %c0_56 = arith.constant 0 : index
    %c0_57 = arith.constant 0 : index
    %138 = vector.load %arg4[%c7, %c0_56, %c0_57] : memref<9x4x4xbf16, #tpu.memory_space<vmem>>, vector<1x4x4xbf16>
    %139 = vector.shape_cast %138 : vector<1x4x4xbf16> to vector<4x4xbf16>
    %140 = arith.truncf %137 : vector<4x512xf32> to vector<4x512xbf16>
    %cst_58 = arith.constant dense<0.000000e+00> : vector<4x512xf32>
    %141 = tpu.matmul %139, %140, %cst_58 {dimension_numbers = #tpu.dot_dimension_numbers<[1], [0], [0], [1], [0, 0, 1, 1], [], []>} : vector<4x4xbf16>, vector<4x512xbf16>, vector<4x512xf32> -> vector<4x512xf32>
    %142 = arith.addf %132, %141 : vector<4x512xf32>
    %c495_i32 = arith.constant 495 : i32
    %143 = tpu.dynamic_rotate %22 by %c495_i32 dim 1 : vector<4x512xf32>, i32 -> vector<4x512xf32>
    %144 = arith.andi %59, %63 : vector<1x512xi1>
    %cst_59 = arith.constant 0.000000e+00 : f32
    %145 = vector.shape_cast %144 : vector<1x512xi1> to vector<1x512xi1>
    %146 = vector.broadcast %145 : vector<1x512xi1> to vector<4x512xi1>
    %147 = vector.broadcast %cst_59 : f32 to vector<4x512xf32>
    %148 = arith.select %146, %143, %147 : vector<4x512xi1>, vector<4x512xf32>
    %c8_60 = arith.constant 8 : index
    %c0_61 = arith.constant 0 : index
    %c0_62 = arith.constant 0 : index
    %149 = vector.load %arg4[%c8_60, %c0_61, %c0_62] : memref<9x4x4xbf16, #tpu.memory_space<vmem>>, vector<1x4x4xbf16>
    %150 = vector.shape_cast %149 : vector<1x4x4xbf16> to vector<4x4xbf16>
    %151 = arith.truncf %148 : vector<4x512xf32> to vector<4x512xbf16>
    %cst_63 = arith.constant dense<0.000000e+00> : vector<4x512xf32>
    %152 = tpu.matmul %150, %151, %cst_63 {dimension_numbers = #tpu.dot_dimension_numbers<[1], [0], [0], [1], [0, 0, 1, 1], [], []>} : vector<4x4xbf16>, vector<4x512xbf16>, vector<4x512xf32> -> vector<4x512xf32>
    %153 = arith.addf %142, %152 : vector<4x512xf32>
    %154 = vector.broadcast %4 : vector<4x1xf32> to vector<4x512xf32>
    %155 = arith.mulf %153, %154 : vector<4x512xf32>
    %156 = vector.broadcast %5 : vector<4x1xf32> to vector<4x512xf32>
    %157 = arith.addf %155, %156 : vector<4x512xf32>
    %cst_64 = arith.constant 0.000000e+00 : f32
    %158 = vector.broadcast %cst_64 : f32 to vector<4x512xf32>
    %159 = arith.maximumf %157, %158 : vector<4x512xf32>
    %c0_65 = arith.constant 0 : index
    %c0_66 = arith.constant 0 : index
    %160 = vector.load %arg5[%c0_65, %c0_66] : memref<8x4xbf16, #tpu.memory_space<vmem>>, vector<8x4xbf16>
    %161 = arith.truncf %159 : vector<4x512xf32> to vector<4x512xbf16>
    %cst_67 = arith.constant dense<0.000000e+00> : vector<8x512xf32>
    %162 = tpu.matmul %160, %161, %cst_67 {dimension_numbers = #tpu.dot_dimension_numbers<[1], [0], [0], [1], [0, 0, 1, 1], [], []>} : vector<8x4xbf16>, vector<4x512xbf16>, vector<8x512xf32> -> vector<8x512xf32>
    %163 = vector.broadcast %6 : vector<8x1xf32> to vector<8x512xf32>
    %164 = arith.addf %162, %163 : vector<8x512xf32>
    %c0_68 = arith.constant 0 : index
    %c0_69 = arith.constant 0 : index
    %165 = vector.load %arg6[%c0_68, %c0_69] : memref<8x512xf32, #tpu.memory_space<vmem>>, vector<8x512xf32>
    tpu.vector_store %arg6[%c0_68, %c0_69], %164 {strides = array<i32>} : memref<8x512xf32, #tpu.memory_space<vmem>>, vector<8x512xf32>,
    return
  }
  func.func @transform_0(%arg0: i32) -> (i32, i32) {
    %c0_i32 = arith.constant 0 : i32
    %c0_i32_0 = arith.constant 0 : i32
    return %c0_i32, %arg0 : i32, i32
  }
  func.func @transform_1(%arg0: i32) -> (i32, i32) {
    %c0_i32 = arith.constant 0 : i32
    %c0_i32_0 = arith.constant 0 : i32
    %c0_i32_1 = arith.constant 0 : i32
    return %c0_i32, %c0_i32_0 : i32, i32
  }
  func.func @transform_2(%arg0: i32) -> (i32, i32) {
    %c0_i32 = arith.constant 0 : i32
    %c0_i32_0 = arith.constant 0 : i32
    %c0_i32_1 = arith.constant 0 : i32
    return %c0_i32, %c0_i32_0 : i32, i32
  }
  func.func @transform_3(%arg0: i32) -> (i32, i32, i32) {
    %c0_i32 = arith.constant 0 : i32
    %c0_i32_0 = arith.constant 0 : i32
    %c0_i32_1 = arith.constant 0 : i32
    %c0_i32_2 = arith.constant 0 : i32
    return %c0_i32, %c0_i32_0, %c0_i32_1 : i32, i32, i32
  }
  func.func @transform_4(%arg0: i32) -> (i32, i32) {
    %c0_i32 = arith.constant 0 : i32
    %c0_i32_0 = arith.constant 0 : i32
    %c0_i32_1 = arith.constant 0 : i32
    return %c0_i32, %c0_i32_0 : i32, i32
  }
  func.func @transform_5(%arg0: i32) -> (i32, i32) {
    %c0_i32 = arith.constant 0 : i32
    %c0_i32_0 = arith.constant 0 : i32
    return %c0_i32, %arg0 : i32, i32
  }
}

</mosaic_0001>

<bundles_post_ra>
// kernel: tpu_custom_call.1
= control target key start
LH: loop header
LB: loop body
LE: loop exit
PB: predicated region body
PF: predicated region fallthrough
CT: control target
= control target key end

     0   :  { %v1432_v1 = vmov 0   ;;  %s1842_s0 = inlined_call_operand.vmem [shape: f32[4,512], index: 0, kind: input, shape index: {}]   ;;  %s1843_s1 = inlined_call_operand.vmem [shape: f32[56,1], index: 1, kind: input, shape index: {}]   ;;  %s1844_s2 = inlined_call_operand.vmem [shape: bf16[4,4], index: 2, kind: input, shape index: {}]   ;;  %s1845_s3 = inlined_call_operand.vmem [shape: bf16[9,4,4], index: 3, kind: input, shape index: {}]   ;;  %s1846_s4 = inlined_call_operand.vmem [shape: bf16[8,4], index: 4, kind: input, shape index: {}]   ;;  %s1847_s5 = inlined_call_operand.hbm [shape: f32[8,512], index: 5, kind: output, shape index: {}]  }
   0x1   :  { %v22_v0 = vld [vmem:[%s1843_s1] sm:$0xf]  ;;  %1363 = vset.pattern.permute.xlu0 %v1432_v1  ;;  %1364 = vset.pattern.permute.xlu1 %v1432_v1 }
   0x2   :  { %10 = vsyncpa [#allocation3], 0  ;;  %33 = vperm.xlu0 %1363, %v22_v0   ;;  %1405 = vset.pattern.permute.xlu2 %v1432_v1  ;;  %v23_v2 = vld [vmem:[%s1843_s1 + $0x8] sm:$0xf]  ;;  %v1433_v3 = vmov 839922192   ;;  %v164_v60 = vlaneseq }
   0x3   :  { %v36_v4 = vunpack.c.l.s4 %v1433_v3  ;;  %v24_v5 = vld [vmem:[%s1843_s1 + $0x10] sm:$0xf]  ;;  %v25_v8 = vld [vmem:[%s1843_s1 + $0x18] sm:$0xf]  ;;  %v29_v10 = vld [vmem:[%s1842_s0] sm:$0xff]  ;;  %vm77_vm0 = vcmask 1041408  }
   0x4   :  { %144 = vperm.xlu1 %1364, %v24_v5   ;;  %v30_v11 = vld [vmem:[%s1842_s0 + $0x8] sm:$0xff]  ;;  %v55_v32 = vld [vmem:[%s1844_s2] sm:$0x3]  ;;  %vm73_vm1 = vcmask 31744   ;;  %s1434_s2 = smov 16   ;;  %s1435_s6 = smov 17  }
   0x5   :  { %v37_v7 = vunpack.c.0.s8 %v36_v4  ;;  %s1436_s7 = smov 15   ;;  %s1437_s8 = smov 1   ;;  %v28_v58 = vld [vmem:[%s1843_s1 + $0x30] sm:$0xff]  ;;  %v26_v59 = vld [vmem:[%s1843_s1 + $0x20] sm:$0xf]  ;;  %v1538_v61 = vand.u32 127, %v164_v60 }
   0x6   :  { %s1438_s9 = smov 127   ;;  %s1439_s10 = smov 113   ;;  %v310_v60 = vld [vmem:[%s1845_s3] sm:$0x3] }
   0x7   :  { %s1440_s11 = smov 112   ;;  %s1441_s12 = smov 111   ;;  %v167_v62 = vadd.s32 256, %v1538_v61  ;;  %vm323_vm2 = vcmp.lt.s32.totalorder %v1538_v61, 16  ;;  %vm289_vm6 = vcmp.lt.s32.totalorder %v1538_v61, 17  ;;  %vm488_vm13 = vcmp.lt.s32.totalorder %v1538_v61, 15 }
   0x8   :  { %s1291_s13 = sshll.u32 %s1847_s5, 4  ;;  %s1292_s13 = int_to_ptr.hbm [resolvable:$true] %s1291_s13 }
   0x9   :  { %v187_v63 = vand.u32 255, %v167_v62 }
   0xa   :  { %44 = vperm.xlu0 %1363, %v23_v2  }
   0xb   :  { %vm1542_vm3 = vcmp.ge.s32.totalorder %v187_v63, 16 }
   0xc   :  { %153 = vperm.xlu1 %1364, %v25_v8  }
  0x74   :  { %v34_v6 = vpop.permute.xlu0 %33 }
  0x75   :  { %v38_v9 = vperm.slane %v34_v6, %v37_v7 }
  0x76   :  { %v145_v33 = vpop.permute.xlu1 %144 }
  0x77   :  { %v40_v13 = vmul.f32 %v38_v9, %v29_v10  ;;  %v41_v14 = vmul.f32 %v38_v9, %v30_v11  ;;  %v1304_v9 = vld [vmem:[%s1845_s3 + $0x2] sm:$0x3] }
  0x7c   :  { %v45_v12 = vpop.permute.xlu0 %44 }
  0x7d   :  { %v49_v15 = vperm.slane %v45_v12, %v37_v7  ;;  %v173_v12 = vand.u32 255, %v1538_v61 }
  0x7e   :  { %v154_v37 = vpop.permute.xlu1 %153 }
  0x7f   :  { %v51_v16 = vadd.f32 %v49_v15, %v40_v13  ;;  %v52_v17 = vadd.f32 %v49_v15, %v41_v14  ;;  %v1560_v14 = vadd.s32 128, %v1538_v61  ;;  %v1563_v15 = vadd.s32 384, %v1538_v61 }
  0x80   :  { %vm1565_vm4 = vcmp.ge.s32.totalorder %v173_v12, 16 }
  0x81   :  { %v53_v18 = vmax.f32 %v51_v16, 0.0  ;;  %v54_v19 = vmax.f32 %v52_v17, 0.0 }
  0x83   :  { %58 = vst [vmem:[#allocation1] ss:$2 sm:$0xff] %v53_v18  ;;  %v1569_v18 = vand.u32 15, %v173_v12 }
  0x84   :  { %60 = vst [vmem:[#allocation1 + $0x10] ss:$2 sm:$0xff] %v54_v19 }
  0x85   :  { %vm273_vm5 = vcmp.ge.s32.totalorder %v1569_v18, 1  ;;  %vm277_vm12 = vcmp.lt.s32.totalorder %v1569_v18, 15 }
  0x86   :  { %vm294_vm7 = vmand %vm1565_vm4, %vm273_vm5 }
  0x87   :  { %vm493_vm14 = vmand %vm1565_vm4, %vm277_vm12 }
  0x8a   :  { %v61_v20 = vld.sshfl [vmem:[#allocation1] sm:$0xff pattern:$0x75316420]  ;;  %v62_v21 = vld.sshfl [vmem:[#allocation1 + $0x8] sm:$0xff pattern:$0x75316420] }
  0x8b   :  { %v69_v22 = vpack.c.bf16 %v61_v20, %v61_v20  ;;  %v70_v23 = vpack.c.bf16 %v62_v21, %v62_v21  ;;  %v63_v24 = vld.sshfl [vmem:[#allocation1 + $0x10] sm:$0xff pattern:$0x75316420]  ;;  %v64_v25 = vld.sshfl [vmem:[#allocation1 + $0x18] sm:$0xff pattern:$0x75316420] }
  0x8c   :  { %v71_v26 = vpack.c.bf16 %v63_v24, %v63_v24  ;;  %v72_v27 = vpack.c.bf16 %v64_v25, %v64_v25  ;;  %v180_v21 = vand.u32 255, %v1560_v14  ;;  %v194_v24 = vand.u32 255, %v1563_v15 }
  0x8d   :  { %v79_v28 = vsel %vm77_vm0, %v69_v22, 0  ;;  %v82_v29 = vsel %vm77_vm0, %v70_v23, 0  ;;  %v1580_v25 = vand.u32 15, %v187_v63 }
  0x8e   :  { %97 = vmatpush.bf16.msra.mxu0 %v79_v28  ;;  %110 = vmatpush.bf16.msra.mxu1 %v82_v29  ;;  %v85_v30 = vsel %vm77_vm0, %v71_v26, 0  ;;  %v88_v31 = vsel %vm77_vm0, %v72_v27, 0 }
  0x8f   :  { %123 = vmatpush.bf16.msra.mxu2 %v85_v30  ;;  %136 = vmatpush.bf16.msra.mxu3 %v88_v31  ;;  %v1587_v30 = vand.u32 15, %v180_v21  ;;  %v1592_v31 = vand.u32 15, %v194_v24  ;;  %vm275_vm8 = vcmp.ge.s32.totalorder %v1580_v25, 1  ;;  %vm279_vm15 = vcmp.lt.s32.totalorder %v1580_v25, 15 }
  0x90   :  { %vm296_vm10 = vmand %vm1542_vm3, %vm275_vm8 }
  0x91   :  { %1300 = vmatmul.msk.bf16.vlgmr.msra.gmra.mxu0 %vm73_vm1, %v55_v32  ;;  %1301 = vmatmul.msk.bf16.vlgmr.msra.gmra.mxu1 %vm73_vm1, %v55_v32  ;;  %vm274_vm9 = vcmp.ge.s32.totalorder %v1587_v30, 1  ;;  %vm276_vm11 = vcmp.ge.s32.totalorder %v1592_v31, 1 }
  0x92   :  { %1302 = vmatmul.msk.bf16.vlgmr.msra.gmra.mxu2 %vm73_vm1, %v55_v32  ;;  %1303 = vmatmul.msk.bf16.vlgmr.msra.gmra.mxu3 %vm73_vm1, %v55_v32 }
 0x10e   :  { %v99_v34 = vpop.f32.mrf.mxu0  ;;  %v112_v35 = vpop.f32.mrf.mxu1 }
 0x10f   :  { %v147_v36 = vmul.f32 %v145_v33, %v99_v34  ;;  %v148_v39 = vmul.f32 %v145_v33, %v112_v35 }
 0x111   :  { %v156_v38 = vadd.f32 %v154_v37, %v147_v36  ;;  %v157_v43 = vadd.f32 %v154_v37, %v148_v39 }
 0x113   :  { %v1502_v40 = vmax.f32 %v156_v38, 0.0  ;;  %v1505_v48 = vmax.f32 %v157_v43, 0.0 }
 0x115   :  { %v125_v41 = vpop.f32.mrf.mxu2  ;;  %v138_v42 = vpop.f32.mrf.mxu3  ;;  %315 = vrot.lane.b32.xlu0 %v1502_v40, %s1434_s2 }
 0x116   :  { %v149_v44 = vmul.f32 %v145_v33, %v125_v41  ;;  %v101_v45 = vpop.f32.mrf.mxu0  ;;  %v114_v46 = vpop.f32.mrf.mxu1  ;;  %v150_v50 = vmul.f32 %v145_v33, %v138_v42 }
 0x118   :  { %v158_v47 = vadd.f32 %v154_v37, %v149_v44  ;;  %v159_v54 = vadd.f32 %v154_v37, %v150_v50 }
 0x11a   :  { %v1507_v49 = vmax.f32 %v158_v47, 0.0  ;;  %v1512_v55 = vmax.f32 %v159_v54, 0.0 }
 0x11c   :  { %v1370_v51 = vpack.i.bf16 %v1507_v49, %v1505_v48  ;;  %v1385_v56 = vpack.i.bf16 %v1507_v49, %v1502_v40  ;;  %v1395_v57 = vpack.i.bf16 %v1512_v55, %v1502_v40 }
 0x11d   :  { %v127_v52 = vpop.f32.mrf.mxu2  ;;  %281 = vrot.lane.b32.xlu0 %v1502_v40, %s1435_s6  ;;  %v140_v53 = vpop.f32.mrf.mxu3 }
 0x11e   :  { %1371 = vrot.lane.b32.xlu1 %v1370_v51, %s1435_s6  ;;  %1366 = vrot.lane.b32.xlu2 %v1370_v51, %s1434_s2 }
 0x125   :  { %480 = vrot.lane.b32.xlu0 %v1502_v40, %s1436_s7 }
 0x126   :  { %1376 = vrot.lane.b32.xlu1 %v1370_v51, %s1436_s7  ;;  %321 = vrot.lane.b32.xlu2 %v1512_v55, %s1434_s2 }
 0x12d   :  { %586 = vrot.lane.b32.xlu0 %v1502_v40, %s1437_s8 }
 0x12e   :  { %1381 = vrot.lane.b32.xlu1 %v1370_v51, %s1437_s8  ;;  %287 = vrot.lane.b32.xlu2 %v1512_v55, %s1435_s6 }
 0x135   :  { %767 = vrot.lane.b32.xlu0 %v1505_v48, %s1438_s9 }
 0x136   :  { %486 = vrot.lane.b32.xlu2 %v1512_v55, %s1436_s7  ;;  %1386 = vrot.lane.b32.xlu1 %v1385_v56, %s1438_s9 }
 0x13d   :  { %869 = vrot.lane.b32.xlu0 %v1505_v48, %s1439_s10 }
 0x13e   :  { %592 = vrot.lane.b32.xlu2 %v1512_v55, %s1437_s8  ;;  %1391 = vrot.lane.b32.xlu1 %v1385_v56, %s1439_s10 }
 0x145   :  { %975 = vrot.lane.b32.xlu0 %v1505_v48, %s1440_s11 }
 0x146   :  { %771 = vrot.lane.b32.xlu2 %v1512_v55, %s1438_s9  ;;  %1396 = vrot.lane.b32.xlu1 %v1395_v57, %s1440_s11 }
 0x14d   :  { %1077 = vrot.lane.b32.xlu0 %v1505_v48, %s1441_s12 }
 0x14e   :  { %873 = vrot.lane.b32.xlu2 %v1512_v55, %s1439_s10  ;;  %1401 = vrot.lane.b32.xlu1 %v1385_v56, %s1441_s12 }
 0x155   :  { %1210 = vperm.xlu0 %1363, %v28_v58  }
 0x156   :  { %977 = vrot.lane.b32.xlu2 %v1507_v49, %s1440_s11  ;;  %1183 = vperm.xlu1 %1364, %v26_v59  }
 0x15e   :  { %1081 = vrot.lane.b32.xlu2 %v1512_v55, %s1441_s12 }
 0x178   :  { %v1367_v0 = vpop.permute.xlu2 %1366 }
 0x179   :  { %v1369_v1 = vunpack.i.h.bf16 %v1367_v0  ;;  %v1368_v2 = vunpack.i.l.bf16 %v1367_v0 }
 0x17b   :  { %v325_v4 = vsel %vm323_vm2, %v1368_v2, %v1369_v1 }
 0x17c   :  { %v338_v5 = vsel %vm1542_vm3, %v325_v4, 0.0 }
 0x17d   :  { %v344_v6 = vpack.c.bf16 %v338_v5, %v338_v5 }
 0x17f   :  { %v356_v7 = vsel %vm77_vm0, %v344_v6, 0 }
 0x180   :  { %v322_v8 = vpop.permute.xlu2 %321  ;;  %394 = vmatpush.bf16.msrb.mxu2 %v356_v7 }
 0x181   :  { %v324_v10 = vsel %vm323_vm2, %v1369_v1, %v322_v8 }
 0x182   :  { %v345_v11 = vpack.c.bf16 %v324_v10, %v324_v10 }
 0x183   :  { %1307 = vmatmul.msk.bf16.vlgmr.msrb.gmra.mxu2 %vm73_vm1, %v1304_v9 }
 0x184   :  { %v359_v13 = vsel %vm77_vm0, %v345_v11, 0 }
 0x185   :  { %407 = vmatpush.bf16.msrb.mxu3 %v359_v13 }
 0x187   :  { %v316_v17 = vpop.permute.xlu0 %315 }
 0x188   :  { %1308 = vmatmul.msk.bf16.vlgmr.msrb.gmra.mxu3 %vm73_vm1, %v1304_v9  ;;  %v326_v19 = vsel %vm323_vm2, %v316_v17, %v1368_v2  ;;  %v327_v20 = vsel %vm323_vm2, %v322_v8, %v316_v17  ;;  %v288_v27 = vpop.permute.xlu2 %287  ;;  %vm278_vm2 = vcmp.lt.s32.totalorder %v1587_v30, 15 }
 0x189   :  { %v343_v22 = vpack.c.bf16 %v326_v19, %v326_v19  ;;  %v336_v23 = vsel %vm1565_vm4, %v327_v20, 0.0  ;;  %vm495_vm4 = vmand %vm1542_vm3, %vm279_vm15  ;;  %vm594_vm3 = vcmp.lt.s32.totalorder %v1538_v61, 1 }
 0x18a   :  { %v342_v26 = vpack.c.bf16 %v336_v23, %v336_v23 }
 0x18b   :  { %v353_v28 = vsel %vm77_vm0, %v343_v22, 0 }
 0x18c   :  { %381 = vmatpush.bf16.msrb.mxu1 %v353_v28  ;;  %v350_v29 = vsel %vm77_vm0, %v342_v26, 0 }
 0x18d   :  { %368 = vmatpush.bf16.msrb.mxu0 %v350_v29 }
 0x18f   :  { %1306 = vmatmul.msk.bf16.vlgmr.msrb.gmra.mxu1 %vm73_vm1, %v1304_v9  ;;  %v282_v32 = vpop.permute.xlu0 %281 }
 0x190   :  { %v1372_v33 = vpop.permute.xlu1 %1371  ;;  %v293_v34 = vsel %vm289_vm6, %v288_v27, %v282_v32  ;;  %1305 = vmatmul.msk.bf16.vlgmr.msrb.gmra.mxu0 %vm73_vm1, %v1304_v9  ;;  %v487_v47 = vpop.permute.xlu2 %486 }
 0x191   :  { %v1374_v35 = vunpack.i.h.bf16 %v1372_v33  ;;  %v1373_v36 = vunpack.i.l.bf16 %v1372_v33  ;;  %v306_v37 = vsel %vm294_vm7, %v293_v34, 0.0  ;;  %vm773_vm7 = vcmp.lt.s32.totalorder %v1538_v61, 127 }
 0x192   :  { %v311_v38 = vpack.c.bf16 %v306_v37, %v306_v37 }
 0x193   :  { %v292_v39 = vsel %vm289_vm6, %v282_v32, %v1373_v36  ;;  %v291_v41 = vsel %vm289_vm6, %v1373_v36, %v1374_v35  ;;  %v290_v42 = vsel %vm289_vm6, %v1374_v35, %v288_v27  ;;  %vm280_vm6 = vcmp.lt.s32.totalorder %v1592_v31, 15 }
 0x194   :  { %v307_v43 = vsel %vm274_vm9, %v292_v39, 0.0  ;;  %v417_v44 = vsel %vm77_vm0, %v311_v38, 0  ;;  %v308_v45 = vsel %vm296_vm10, %v291_v41, 0.0  ;;  %v309_v46 = vsel %vm276_vm11, %v290_v42, 0.0 }
 0x195   :  { %v312_v50 = vpack.c.bf16 %v307_v43, %v307_v43  ;;  %435 = vmatpush.bf16.msra.mxu0 %v417_v44  ;;  %v313_v51 = vpack.c.bf16 %v308_v45, %v308_v45  ;;  %v314_v52 = vpack.c.bf16 %v309_v46, %v309_v46  ;;  %v692_v45 = vpack.c.bf16 %v1507_v49, %v1507_v49  ;;  %v1313_v46 = vld [vmem:[%s1845_s3 + $0x4] sm:$0x3] }
 0x196   :  { %vm875_vm10 = vcmp.lt.s32.totalorder %v1538_v61, 113 }
 0x197   :  { %v420_v53 = vsel %vm77_vm0, %v312_v50, 0  ;;  %v423_v54 = vsel %vm77_vm0, %v313_v51, 0  ;;  %v426_v56 = vsel %vm77_vm0, %v314_v52, 0  ;;  %v481_v57 = vpop.permute.xlu0 %480  ;;  %v704_v51 = vsel %vm77_vm0, %v692_v45, 0 }
 0x198   :  { %v1377_v58 = vpop.permute.xlu1 %1376  ;;  %448 = vmatpush.bf16.msra.mxu1 %v420_v53  ;;  %461 = vmatpush.bf16.msra.mxu2 %v423_v54  ;;  %v492_v59 = vsel %vm488_vm13, %v487_v47, %v481_v57  ;;  %v593_v12 = vpop.permute.xlu2 %592  ;;  %v691_v52 = vpack.c.bf16 %v1505_v48, %v1505_v48  ;;  %v690_v54 = vpack.c.bf16 %v1502_v40, %v1502_v40 }
 0x199   :  { %v1379_v62 = vunpack.i.h.bf16 %v1377_v58  ;;  %v1378_v63 = vunpack.i.l.bf16 %v1377_v58  ;;  %474 = vmatpush.bf16.msra.mxu3 %v426_v56  ;;  %v505_v0 = vsel %vm493_vm14, %v492_v59, 0.0  ;;  %vm1730_vm14 = vcmp.lt.s32.totalorder %v180_v21, 240 }
 0x19a   :  { %v511_v1 = vpack.c.bf16 %v505_v0, %v505_v0  ;;  %v701_v56 = vsel %vm77_vm0, %v691_v52, 0  ;;  %v698_v48 = vsel %vm77_vm0, %v690_v54, 0 }
 0x19b   :  { %v491_v2 = vsel %vm488_vm13, %v481_v57, %v1378_v63  ;;  %1311 = vmatmul.msk.bf16.vlgmr.msra.gmra.mxu2 %vm73_vm1, %v310_v60  ;;  %v490_v4 = vsel %vm488_vm13, %v1378_v63, %v1379_v62  ;;  %v489_v5 = vsel %vm488_vm13, %v1379_v62, %v487_v47  ;;  %v693_v47 = vpack.c.bf16 %v1512_v55, %v1512_v55 }
 0x19c   :  { %v506_v6 = vsel %vm278_vm2, %v491_v2, 0.0  ;;  %1312 = vmatmul.msk.bf16.vlgmr.msra.gmra.mxu3 %vm73_vm1, %v310_v60  ;;  %v519_v3 = vsel %vm77_vm0, %v511_v1, 0  ;;  %v507_v7 = vsel %vm495_vm4, %v490_v4, 0.0  ;;  %v508_v8 = vsel %vm280_vm6, %v489_v5, 0.0  ;;  %v1318_v4 = vld [vmem:[%s1845_s3 + $0x6] sm:$0x3] }
 0x19d   :  { %v512_v9 = vpack.c.bf16 %v506_v6, %v506_v6  ;;  %537 = vmatpush.bf16.msrb.mxu0 %v519_v3  ;;  %v513_v10 = vpack.c.bf16 %v507_v7, %v507_v7  ;;  %v514_v11 = vpack.c.bf16 %v508_v8, %v508_v8  ;;  %v707_v49 = vsel %vm77_vm0, %v693_v47, 0 }
 0x19e   :  { %vm1720_vm13 = vcmp.lt.s32.totalorder %v194_v24, 240 }
 0x19f   :  { %1310 = vmatmul.msk.bf16.vlgmr.msra.gmra.mxu1 %vm73_vm1, %v310_v60  ;;  %v522_v13 = vsel %vm77_vm0, %v512_v9, 0  ;;  %v525_v16 = vsel %vm77_vm0, %v513_v10, 0  ;;  %v528_v17 = vsel %vm77_vm0, %v514_v11, 0  ;;  %v587_v19 = vpop.permute.xlu0 %586  ;;  %vm883_vm4 = vmand %vm1720_vm13, %vm276_vm11 }
 0x1a0   :  { %v1382_v20 = vpop.permute.xlu1 %1381  ;;  %550 = vmatpush.bf16.msrb.mxu1 %v522_v13  ;;  %563 = vmatpush.bf16.msrb.mxu2 %v525_v16  ;;  %v598_v22 = vsel %vm594_vm3, %v593_v12, %v587_v19  ;;  %v772_v57 = vpop.permute.xlu2 %771  ;;  %v1338_v16 = vld [vmem:[%s1845_s3 + $0xe] sm:$0x3] }
 0x1a1   :  { %v1384_v23 = vunpack.i.h.bf16 %v1382_v20  ;;  %v1383_v26 = vunpack.i.l.bf16 %v1382_v20  ;;  %576 = vmatpush.bf16.msrb.mxu3 %v528_v17  ;;  %v607_v27 = vsel %vm273_vm5, %v598_v22, 0.0  ;;  %1309 = vmatmul.msk.bf16.vlgmr.msra.gmra.mxu0 %vm73_vm1, %v310_v60 }
 0x1a2   :  { %v613_v28 = vpack.c.bf16 %v607_v27, %v607_v27 }
 0x1a3   :  { %v597_v29 = vsel %vm594_vm3, %v587_v19, %v1383_v26  ;;  %v596_v32 = vsel %vm594_vm3, %v1383_v26, %v1384_v23  ;;  %v595_v33 = vsel %vm594_vm3, %v1384_v23, %v593_v12  ;;  %vm881_vm3 = vmand %vm1730_vm14, %vm274_vm9 }
 0x1a4   :  { %v608_v34 = vsel %vm274_vm9, %v597_v29, 0.0  ;;  %v621_v35 = vsel %vm77_vm0, %v613_v28, 0  ;;  %v609_v36 = vsel %vm275_vm8, %v596_v32, 0.0  ;;  %v610_v37 = vsel %vm276_vm11, %v595_v33, 0.0  ;;  %v1323_v29 = vld [vmem:[%s1845_s3 + $0x8] sm:$0x3]  ;;  %vm1091_vm9 = vmand %vm1720_vm13, %vm280_vm6 }
 0x1a5   :  { %v614_v38 = vpack.c.bf16 %v608_v34, %v608_v34  ;;  %639 = vmatpush.bf16.msra.mxu0 %v621_v35  ;;  %v615_v39 = vpack.c.bf16 %v609_v36, %v609_v36  ;;  %v616_v41 = vpack.c.bf16 %v610_v37, %v610_v37  ;;  %vm1089_vm11 = vmand %vm1730_vm14, %vm278_vm2 }
 0x1a7   :  { %v627_v42 = vsel %vm77_vm0, %v615_v39, 0  ;;  %v630_v43 = vsel %vm77_vm0, %v616_v41, 0  ;;  %v624_v44 = vsel %vm77_vm0, %v614_v38, 0  ;;  %v768_v60 = vpop.permute.xlu0 %767 }
 0x1a8   :  { %665 = vmatpush.bf16.msra.mxu2 %v627_v42  ;;  %678 = vmatpush.bf16.msra.mxu3 %v630_v43  ;;  %v1387_v50 = vpop.permute.xlu1 %1386  ;;  %v874_v17 = vpop.permute.xlu2 %873 }
 0x1a9   :  { %652 = vmatpush.bf16.msra.mxu1 %v624_v44  ;;  %v1389_v53 = vunpack.i.h.bf16 %v1387_v50  ;;  %v1388_v55 = vunpack.i.l.bf16 %v1387_v50 }
 0x1ab   :  { %1316 = vmatmul.msk.bf16.vlgmr.msrb.gmra.mxu2 %vm73_vm1, %v1313_v46  ;;  %v774_v58 = vsel %vm773_vm7, %v1389_v53, %v772_v57  ;;  %v777_v59 = vsel %vm773_vm7, %v772_v57, %v1388_v55  ;;  %v775_v62 = vsel %vm773_vm7, %v768_v60, %v1389_v53  ;;  %v776_v0 = vsel %vm773_vm7, %v1388_v55, %v768_v60  ;;  %v1328_v53 = vld [vmem:[%s1845_s3 + $0xa] sm:$0x3] }
 0x1ac   :  { %1317 = vmatmul.msk.bf16.vlgmr.msrb.gmra.mxu3 %vm73_vm1, %v1313_v46  ;;  %742 = vmatpush.bf16.msrb.mxu2 %v704_v51  ;;  %v788_v40 = vsel %vm279_vm15, %v774_v58, 0.0  ;;  %v789_v63 = vsel %vm280_vm6, %v777_v59, 0.0  ;;  %v787_v2 = vsel %vm278_vm2, %v775_v62, 0.0  ;;  %v786_v6 = vsel %vm277_vm12, %v776_v0, 0.0 }
 0x1ad   :  { %755 = vmatpush.bf16.msrb.mxu3 %v707_v49  ;;  %v794_v1 = vpack.c.bf16 %v788_v40, %v788_v40  ;;  %v795_v5 = vpack.c.bf16 %v789_v63, %v789_v63  ;;  %v793_v7 = vpack.c.bf16 %v787_v2, %v787_v2  ;;  %v792_v10 = vpack.c.bf16 %v786_v6, %v786_v6 }
 0x1af   :  { %1315 = vmatmul.msk.bf16.vlgmr.msrb.gmra.mxu1 %vm73_vm1, %v1313_v46  ;;  %v806_v8 = vsel %vm77_vm0, %v794_v1, 0  ;;  %v809_v9 = vsel %vm77_vm0, %v795_v5, 0  ;;  %v803_v13 = vsel %vm77_vm0, %v793_v7, 0  ;;  %v800_v19 = vsel %vm77_vm0, %v792_v10, 0  ;;  %v870_v24 = vpop.permute.xlu0 %869 }
 0x1b0   :  { %729 = vmatpush.bf16.msrb.mxu1 %v701_v56  ;;  %v1392_v3 = vpop.permute.xlu1 %1391 }
 0x1b1   :  { %1314 = vmatmul.msk.bf16.vlgmr.msrb.gmra.mxu0 %vm73_vm1, %v1313_v46  ;;  %v1394_v11 = vunpack.i.h.bf16 %v1392_v3  ;;  %v1393_v12 = vunpack.i.l.bf16 %v1392_v3  ;;  %v978_v46 = vpop.permute.xlu2 %977 }
 0x1b2   :  { %716 = vmatpush.bf16.msrb.mxu0 %v698_v48 }
 0x1b3   :  { %v876_v20 = vsel %vm875_vm10, %v1394_v11, %v874_v17  ;;  %v879_v15 = vsel %vm875_vm10, %v874_v17, %v1393_v12  ;;  %v877_v14 = vsel %vm875_vm10, %v870_v24, %v1394_v11  ;;  %v878_v26 = vsel %vm875_vm10, %v1393_v12, %v870_v24 }
 0x1b4   :  { %v894_v23 = vsel %vm275_vm8, %v876_v20, 0.0  ;;  %v895_v21 = vsel %vm883_vm4, %v879_v15, 0.0  ;;  %v893_v28 = vsel %vm881_vm3, %v877_v14, 0.0  ;;  %v892_v33 = vsel %vm273_vm5, %v878_v26, 0.0  ;;  %v27_v26 = vld [vmem:[%s1843_s1 + $0x28] sm:$0xf] }
 0x1b5   :  { %v900_v27 = vpack.c.bf16 %v894_v23, %v894_v23  ;;  %v901_v32 = vpack.c.bf16 %v895_v21, %v895_v21  ;;  %v899_v34 = vpack.c.bf16 %v893_v28, %v893_v28  ;;  %v898_v38 = vpack.c.bf16 %v892_v33, %v892_v33  ;;  %1192 = vperm.xlu2 %1405, %v27_v26  }
 0x1b6   :  { %vm981_vm5 = vcmp.lt.s32.totalorder %v1538_v61, 112  ;;  %vm1083_vm8 = vcmp.lt.s32.totalorder %v1538_v61, 111 }
 0x1b7   :  { %v912_v36 = vsel %vm77_vm0, %v900_v27, 0  ;;  %v915_v37 = vsel %vm77_vm0, %v901_v32, 0  ;;  %v909_v42 = vsel %vm77_vm0, %v899_v34, 0  ;;  %v906_v43 = vsel %vm77_vm0, %v898_v38, 0  ;;  %v976_v44 = vpop.permute.xlu0 %975 }
 0x1b8   :  { %v1397_v35 = vpop.permute.xlu1 %1396  ;;  %v983_v50 = vsel %vm981_vm5, %v976_v44, %v978_v46 }
 0x1b9   :  { %v1399_v39 = vunpack.i.h.bf16 %v1397_v35  ;;  %v1398_v41 = vunpack.i.l.bf16 %v1397_v35  ;;  %v995_v49 = vsel %vm1730_vm14, %v983_v50, 0.0  ;;  %v1082_v63 = vpop.permute.xlu2 %1081 }
 0x1ba   :  { %v1001_v57 = vpack.c.bf16 %v995_v49, %v995_v49 }
 0x1bb   :  { %1321 = vmatmul.msk.bf16.vlgmr.msra.gmra.mxu2 %vm73_vm1, %v1318_v4  ;;  %v985_v45 = vsel %vm981_vm5, %v1399_v39, %v1398_v41  ;;  %v982_v47 = vsel %vm981_vm5, %v978_v46, %v1399_v39  ;;  %v984_v55 = vsel %vm981_vm5, %v1398_v41, %v976_v44 }
 0x1bc   :  { %1322 = vmatmul.msk.bf16.vlgmr.msra.gmra.mxu3 %vm73_vm1, %v1318_v4  ;;  %844 = vmatpush.bf16.msra.mxu2 %v806_v8  ;;  %v997_v51 = vsel %vm1720_vm13, %v985_v45, 0.0  ;;  %v1002_v52 = vpack.c.bf16 %v982_v47, %v982_v47  ;;  %v1000_v59 = vpack.c.bf16 %v984_v55, %v984_v55  ;;  %v1011_v62 = vsel %vm77_vm0, %v1001_v57, 0 }
 0x1bd   :  { %857 = vmatpush.bf16.msra.mxu3 %v809_v9  ;;  %v1003_v54 = vpack.c.bf16 %v997_v51, %v997_v51  ;;  %v1333_v9 = vld [vmem:[%s1845_s3 + $0xc] sm:$0x3] }
 0x1be   :  { %v1014_v48 = vsel %vm77_vm0, %v1002_v52, 0  ;;  %v1008_v0 = vsel %vm77_vm0, %v1000_v59, 0 }
 0x1bf   :  { %1320 = vmatmul.msk.bf16.vlgmr.msra.gmra.mxu1 %vm73_vm1, %v1318_v4  ;;  %v1017_v58 = vsel %vm77_vm0, %v1003_v54, 0 }
 0x1c0   :  { %831 = vmatpush.bf16.msra.mxu1 %v803_v13  ;;  %v1402_v56 = vpop.permute.xlu1 %1401 }
 0x1c1   :  { %1319 = vmatmul.msk.bf16.vlgmr.msra.gmra.mxu0 %vm73_vm1, %v1318_v4  ;;  %v1404_v60 = vunpack.i.h.bf16 %v1402_v56  ;;  %v1403_v40 = vunpack.i.l.bf16 %v1402_v56  ;;  %v1078_v4 = vpop.permute.xlu0 %1077 }
 0x1c2   :  { %818 = vmatpush.bf16.msra.mxu0 %v800_v19  ;;  %v1343_v19 = vld [vmem:[%s1845_s3 + $0x10] sm:$0x3] }
 0x1c3   :  { %v1084_v1 = vsel %vm1083_vm8, %v1404_v60, %v1082_v63  ;;  %v1087_v2 = vsel %vm1083_vm8, %v1082_v63, %v1403_v40  ;;  %v1085_v6 = vsel %vm1083_vm8, %v1078_v4, %v1404_v60  ;;  %v1086_v7 = vsel %vm1083_vm8, %v1403_v40, %v1078_v4 }
 0x1c4   :  { %v1102_v5 = vsel %vm279_vm15, %v1084_v1, 0.0  ;;  %v1103_v3 = vsel %vm1091_vm9, %v1087_v2, 0.0  ;;  %v1101_v8 = vsel %vm1089_vm11, %v1085_v6, 0.0  ;;  %v1100_v30 = vsel %vm277_vm12, %v1086_v7, 0.0 }
 0x1c5   :  { %v1108_v31 = vpack.c.bf16 %v1102_v5, %v1102_v5  ;;  %v1109_v25 = vpack.c.bf16 %v1103_v3, %v1103_v3  ;;  %v1107_v10 = vpack.c.bf16 %v1101_v8, %v1101_v8  ;;  %v1106_v12 = vpack.c.bf16 %v1100_v30, %v1100_v30 }
 0x1c7   :  { %v1120_v11 = vsel %vm77_vm0, %v1108_v31, 0  ;;  %v1123_v61 = vsel %vm77_vm0, %v1109_v25, 0  ;;  %v1117_v13 = vsel %vm77_vm0, %v1107_v10, 0  ;;  %v1114_v18 = vsel %vm77_vm0, %v1106_v12, 0 }
 0x1cb   :  { %1326 = vmatmul.msk.bf16.vlgmr.msrb.gmra.mxu2 %vm73_vm1, %v1323_v29 }
 0x1cc   :  { %1327 = vmatmul.msk.bf16.vlgmr.msrb.gmra.mxu3 %vm73_vm1, %v1323_v29  ;;  %950 = vmatpush.bf16.msrb.mxu2 %v912_v36 }
 0x1cd   :  { %963 = vmatpush.bf16.msrb.mxu3 %v915_v37 }
 0x1cf   :  { %1325 = vmatmul.msk.bf16.vlgmr.msrb.gmra.mxu1 %vm73_vm1, %v1323_v29 }
 0x1d0   :  { %937 = vmatpush.bf16.msrb.mxu1 %v909_v42 }
 0x1d1   :  { %1324 = vmatmul.msk.bf16.vlgmr.msrb.gmra.mxu0 %vm73_vm1, %v1323_v29 }
 0x1d2   :  { %924 = vmatpush.bf16.msrb.mxu0 %v906_v43 }
 0x1db   :  { %1331 = vmatmul.msk.bf16.vlgmr.msra.gmra.mxu2 %vm73_vm1, %v1328_v53 }
 0x1dc   :  { %1332 = vmatmul.msk.bf16.vlgmr.msra.gmra.mxu3 %vm73_vm1, %v1328_v53  ;;  %1052 = vmatpush.bf16.msra.mxu2 %v1014_v48 }
 0x1dd   :  { %1065 = vmatpush.bf16.msra.mxu3 %v1017_v58 }
 0x1df   :  { %1330 = vmatmul.msk.bf16.vlgmr.msra.gmra.mxu1 %vm73_vm1, %v1328_v53 }
 0x1e0   :  { %1039 = vmatpush.bf16.msra.mxu1 %v1011_v62 }
 0x1e1   :  { %1329 = vmatmul.msk.bf16.vlgmr.msra.gmra.mxu0 %vm73_vm1, %v1328_v53 }
 0x1e2   :  { %1026 = vmatpush.bf16.msra.mxu0 %v1008_v0 }
 0x1eb   :  { %1336 = vmatmul.msk.bf16.vlgmr.msrb.gmra.mxu2 %vm73_vm1, %v1333_v9 }
 0x1ec   :  { %1337 = vmatmul.msk.bf16.vlgmr.msrb.gmra.mxu3 %vm73_vm1, %v1333_v9  ;;  %1158 = vmatpush.bf16.msrb.mxu2 %v1120_v11 }
 0x1ed   :  { %1171 = vmatpush.bf16.msrb.mxu3 %v1123_v61 }
 0x1ef   :  { %1335 = vmatmul.msk.bf16.vlgmr.msrb.gmra.mxu1 %vm73_vm1, %v1333_v9 }
 0x1f0   :  { %1145 = vmatpush.bf16.msrb.mxu1 %v1117_v13 }
 0x1f1   :  { %1334 = vmatmul.msk.bf16.vlgmr.msrb.gmra.mxu0 %vm73_vm1, %v1333_v9 }
 0x1f2   :  { %1132 = vmatpush.bf16.msrb.mxu0 %v1114_v18 }
 0x1fb   :  { %1341 = vmatmul.msk.bf16.vlgmr.msra.gmra.mxu2 %vm73_vm1, %v1338_v16 }
 0x1fc   :  { %1342 = vmatmul.msk.bf16.vlgmr.msra.gmra.mxu3 %vm73_vm1, %v1338_v16 }
 0x1ff   :  { %1340 = vmatmul.msk.bf16.vlgmr.msra.gmra.mxu1 %vm73_vm1, %v1338_v16 }
 0x201   :  { %1339 = vmatmul.msk.bf16.vlgmr.msra.gmra.mxu0 %vm73_vm1, %v1338_v16 }
 0x206   :  { %v396_v17 = vpop.f32.mrf.mxu2 }
 0x20b   :  { %v409_v20 = vpop.f32.mrf.mxu3  ;;  %1346 = vmatmul.msk.bf16.vlgmr.msrb.gmra.mxu2 %vm73_vm1, %v1343_v19 }
 0x20c   :  { %1347 = vmatmul.msk.bf16.vlgmr.msrb.gmra.mxu3 %vm73_vm1, %v1343_v19  ;;  %v383_v22 = vpop.f32.mrf.mxu1 }
 0x20d   :  { %v370_v15 = vpop.f32.mrf.mxu0 }
 0x20e   :  { %v398_v24 = vpop.f32.mrf.mxu2 }
 0x20f   :  { %1345 = vmatmul.msk.bf16.vlgmr.msrb.gmra.mxu1 %vm73_vm1, %v1343_v19 }
 0x211   :  { %1344 = vmatmul.msk.bf16.vlgmr.msrb.gmra.mxu0 %vm73_vm1, %v1343_v19 }
 0x213   :  { %v411_v23 = vpop.f32.mrf.mxu3 }
 0x214   :  { %v385_v14 = vpop.f32.mrf.mxu1 }
 0x215   :  { %v372_v21 = vpop.f32.mrf.mxu0 }
 0x21c   :  { %v450_v27 = vpop.f32.mrf.mxu1 }
 0x21d   :  { %v451_v28 = vadd.f32 %v450_v27, %v383_v22 }
 0x21e   :  { %v437_v29 = vpop.f32.mrf.mxu0  ;;  %v463_v32 = vpop.f32.mrf.mxu2 }
 0x21f   :  { %v438_v33 = vadd.f32 %v437_v29, %v370_v15  ;;  %v464_v34 = vadd.f32 %v463_v32, %v396_v17  ;;  %v476_v35 = vpop.f32.mrf.mxu3 }
 0x220   :  { %v477_v36 = vadd.f32 %v476_v35, %v409_v20 }
 0x224   :  { %v452_v37 = vpop.f32.mrf.mxu1 }
 0x226   :  { %v439_v38 = vpop.f32.mrf.mxu0  ;;  %v465_v39 = vpop.f32.mrf.mxu2 }
 0x227   :  { %v478_v41 = vpop.f32.mrf.mxu3 }
 0x22c   :  { %v552_v42 = vpop.f32.mrf.mxu1 }
 0x22d   :  { %v583_v43 = vadd.f32 %v552_v42, %v451_v28 }
 0x22e   :  { %v539_v44 = vpop.f32.mrf.mxu0  ;;  %v565_v45 = vpop.f32.mrf.mxu2 }
 0x22f   :  { %v582_v46 = vadd.f32 %v539_v44, %v438_v33  ;;  %v584_v47 = vadd.f32 %v565_v45, %v464_v34  ;;  %v578_v50 = vpop.f32.mrf.mxu3 }
 0x230   :  { %v585_v51 = vadd.f32 %v578_v50, %v477_v36  ;;  %v1184_v50 = vpop.permute.xlu1 %1183 }
 0x234   :  { %v554_v52 = vpop.f32.mrf.mxu1 }
 0x236   :  { %v541_v49 = vpop.f32.mrf.mxu0  ;;  %v567_v53 = vpop.f32.mrf.mxu2 }
 0x237   :  { %v580_v54 = vpop.f32.mrf.mxu3  ;;  %v1193_v53 = vpop.permute.xlu2 %1192 }
 0x23c   :  { %v654_v55 = vpop.f32.mrf.mxu1 }
 0x23d   :  { %v685_v56 = vadd.f32 %v654_v55, %v583_v43 }
 0x23e   :  { %v641_v57 = vpop.f32.mrf.mxu0  ;;  %v667_v48 = vpop.f32.mrf.mxu2 }
 0x23f   :  { %v684_v58 = vadd.f32 %v641_v57, %v582_v46  ;;  %v686_v59 = vadd.f32 %v667_v48, %v584_v47  ;;  %v680_v60 = vpop.f32.mrf.mxu3 }
 0x240   :  { %v687_v40 = vadd.f32 %v680_v60, %v585_v51 }
 0x244   :  { %v656_v62 = vpop.f32.mrf.mxu1 }
 0x246   :  { %v643_v63 = vpop.f32.mrf.mxu0  ;;  %v669_v0 = vpop.f32.mrf.mxu2 }
 0x247   :  { %v682_v1 = vpop.f32.mrf.mxu3 }
 0x24c   :  { %v731_v2 = vpop.f32.mrf.mxu1 }
 0x24d   :  { %v762_v28 = vadd.f32 %v731_v2, %v685_v56 }
 0x24e   :  { %v718_v4 = vpop.f32.mrf.mxu0  ;;  %v744_v5 = vpop.f32.mrf.mxu2 }
 0x24f   :  { %v757_v6 = vpop.f32.mrf.mxu3  ;;  %v761_v33 = vadd.f32 %v718_v4, %v684_v58  ;;  %v763_v34 = vadd.f32 %v744_v5, %v686_v59 }
 0x250   :  { %v764_v37 = vadd.f32 %v757_v6, %v687_v40 }
 0x254   :  { %v733_v3 = vpop.f32.mrf.mxu1 }
 0x256   :  { %v720_v7 = vpop.f32.mrf.mxu0  ;;  %v746_v31 = vpop.f32.mrf.mxu2 }
 0x257   :  { %v759_v8 = vpop.f32.mrf.mxu3 }
 0x25c   :  { %v833_v9 = vpop.f32.mrf.mxu1 }
 0x25d   :  { %v864_v35 = vadd.f32 %v833_v9, %v762_v28 }
 0x25e   :  { %v820_v25 = vpop.f32.mrf.mxu0  ;;  %v846_v30 = vpop.f32.mrf.mxu2 }
 0x25f   :  { %v859_v10 = vpop.f32.mrf.mxu3  ;;  %v863_v38 = vadd.f32 %v820_v25, %v761_v33  ;;  %v865_v39 = vadd.f32 %v846_v30, %v763_v34 }
 0x260   :  { %v866_v42 = vadd.f32 %v859_v10, %v764_v37 }
 0x264   :  { %v835_v11 = vpop.f32.mrf.mxu1 }
 0x266   :  { %v822_v61 = vpop.f32.mrf.mxu0  ;;  %v848_v12 = vpop.f32.mrf.mxu2 }
 0x267   :  { %v861_v13 = vpop.f32.mrf.mxu3 }
 0x268   :  { %v1203_v13 = vld [vmem:[%s1846_s4] sm:$0xf]  ;;  %s1442_s4 = smov [#allocation2]  }
 0x269   :  { %s1289_s10 = sshll.u32 %s1442_s4, 4  ;;  %s1290_s10 = int_to_ptr.vmem [resolvable:$true] %s1289_s10 }
 0x26c   :  { %v939_v18 = vpop.f32.mrf.mxu1 }
 0x26d   :  { %v970_v41 = vadd.f32 %v939_v18, %v864_v35 }
 0x26e   :  { %v926_v16 = vpop.f32.mrf.mxu0  ;;  %v952_v17 = vpop.f32.mrf.mxu2 }
 0x26f   :  { %v965_v19 = vpop.f32.mrf.mxu3  ;;  %v969_v43 = vadd.f32 %v926_v16, %v863_v38  ;;  %v971_v44 = vadd.f32 %v952_v17, %v865_v39 }
 0x270   :  { %v972_v46 = vadd.f32 %v965_v19, %v866_v42  ;;  %v1211_v19 = vpop.permute.xlu0 %1210 }
 0x274   :  { %v941_v20 = vpop.f32.mrf.mxu1 }
 0x276   :  { %v928_v22 = vpop.f32.mrf.mxu0  ;;  %v954_v15 = vpop.f32.mrf.mxu2 }
 0x277   :  { %v967_v24 = vpop.f32.mrf.mxu3 }
 0x27c   :  { %v1041_v23 = vpop.f32.mrf.mxu1 }
 0x27d   :  { %v1072_v45 = vadd.f32 %v1041_v23, %v970_v41 }
 0x27e   :  { %v1028_v14 = vpop.f32.mrf.mxu0  ;;  %v1054_v21 = vpop.f32.mrf.mxu2 }
 0x27f   :  { %v1067_v26 = vpop.f32.mrf.mxu3  ;;  %v1071_v51 = vadd.f32 %v1028_v14, %v969_v43  ;;  %v1073_v52 = vadd.f32 %v1054_v21, %v971_v44 }
 0x280   :  { %v1074_v54 = vadd.f32 %v1067_v26, %v972_v46 }
 0x284   :  { %v1043_v27 = vpop.f32.mrf.mxu1 }
 0x286   :  { %v1030_v29 = vpop.f32.mrf.mxu0  ;;  %v1056_v32 = vpop.f32.mrf.mxu2 }
 0x287   :  { %v1069_v36 = vpop.f32.mrf.mxu3 }
 0x28c   :  { %v1147_v47 = vpop.f32.mrf.mxu1 }
 0x28d   :  { %v1178_v49 = vadd.f32 %v1147_v47, %v1072_v45 }
 0x28e   :  { %v1134_v55 = vpop.f32.mrf.mxu0  ;;  %v1160_v56 = vpop.f32.mrf.mxu2 }
 0x28f   :  { %v1187_v57 = vmul.f32 %v1184_v50, %v1178_v49  ;;  %v1177_v48 = vadd.f32 %v1134_v55, %v1071_v51  ;;  %v1179_v58 = vadd.f32 %v1160_v56, %v1073_v52  ;;  %v1173_v59 = vpop.f32.mrf.mxu3 }
 0x290   :  { %v1180_v60 = vadd.f32 %v1173_v59, %v1074_v54 }
 0x291   :  { %v1186_v40 = vmul.f32 %v1184_v50, %v1177_v48  ;;  %v1188_v62 = vmul.f32 %v1184_v50, %v1179_v58  ;;  %v1196_v63 = vadd.f32 %v1193_v53, %v1187_v57 }
 0x292   :  { %v1189_v0 = vmul.f32 %v1184_v50, %v1180_v60 }
 0x293   :  { %v1195_v1 = vadd.f32 %v1193_v53, %v1186_v40  ;;  %v1197_v2 = vadd.f32 %v1193_v53, %v1188_v62  ;;  %v1200_v4 = vmax.f32 %v1196_v63, 0.0 }
 0x294   :  { %v1198_v5 = vadd.f32 %v1193_v53, %v1189_v0  ;;  %v1149_v6 = vpop.f32.mrf.mxu1 }
 0x295   :  { %v1199_v3 = vmax.f32 %v1195_v1, 0.0  ;;  %v1201_v7 = vmax.f32 %v1197_v2, 0.0  ;;  %v1205_v31 = vpack.c.bf16 %v1200_v4, %v1200_v4 }
 0x296   :  { %v1202_v8 = vmax.f32 %v1198_v5, 0.0  ;;  %v1136_v9 = vpop.f32.mrf.mxu0  ;;  %v1162_v25 = vpop.f32.mrf.mxu2 }
 0x297   :  { %v1204_v30 = vpack.c.bf16 %v1199_v3, %v1199_v3  ;;  %v1206_v10 = vpack.c.bf16 %v1201_v7, %v1201_v7  ;;  %v1175_v11 = vpop.f32.mrf.mxu3  ;;  %v1220_v61 = vsel %vm77_vm0, %v1205_v31, 0 }
 0x298   :  { %v1207_v12 = vpack.c.bf16 %v1202_v8, %v1202_v8  ;;  %1248 = vmatpush.bf16.msra.mxu1 %v1220_v61 }
 0x299   :  { %v1217_v18 = vsel %vm77_vm0, %v1204_v30, 0  ;;  %v1223_v16 = vsel %vm77_vm0, %v1206_v10, 0 }
 0x29a   :  { %1235 = vmatpush.bf16.msra.mxu0 %v1217_v18  ;;  %1261 = vmatpush.bf16.msra.mxu2 %v1223_v16  ;;  %v1226_v17 = vsel %vm77_vm0, %v1207_v12, 0 }
 0x29b   :  { %1274 = vmatpush.bf16.msra.mxu3 %v1226_v17  ;;  %1349 = vmatmul.msk.bf16.vlgmr.msra.gmra.mxu1 %vm73_vm1, %v1203_v13 }
 0x29d   :  { %1348 = vmatmul.msk.bf16.vlgmr.msra.gmra.mxu0 %vm73_vm1, %v1203_v13  ;;  %1350 = vmatmul.msk.bf16.vlgmr.msra.gmra.mxu2 %vm73_vm1, %v1203_v13 }
 0x29e   :  { %1351 = vmatmul.msk.bf16.vlgmr.msra.gmra.mxu3 %vm73_vm1, %v1203_v13 }
 0x318   :  { %v1250_v20 = vpop.f32.mrf.mxu1 }
 0x319   :  { %v1251_v22 = vadd.f32 %v1250_v20, %v1211_v19 }
 0x31a   :  { %v1237_v15 = vpop.f32.mrf.mxu0 }
 0x31b   :  { %1281 = vst [vmem:[#allocation2 + $0x8] sm:$0xff] %v1251_v22  ;;  %v1238_v24 = vadd.f32 %v1237_v15, %v1211_v19 }
 0x31d   :  { %1280 = vst [vmem:[#allocation2] sm:$0xff] %v1238_v24 }
 0x320   :  { %v1263_v23 = vpop.f32.mrf.mxu2  ;;  %v1252_v14 = vpop.f32.mrf.mxu1 }
 0x321   :  { %v1264_v21 = vadd.f32 %v1263_v23, %v1211_v19  ;;  %v1276_v26 = vpop.f32.mrf.mxu3 }
 0x322   :  { %v1277_v27 = vadd.f32 %v1276_v26, %v1211_v19  ;;  %v1239_v28 = vpop.f32.mrf.mxu0 }
 0x323   :  { %1282 = vst [vmem:[#allocation2 + $0x10] sm:$0xff] %v1264_v21 }
 0x324   :  { %1283 = vst [vmem:[#allocation2 + $0x18] sm:$0xff] %v1277_v27 }
 0x325   :  { %1294 = dma.vmem_to_hbm [thread:$0]  %s1290_s10, 512, %s1292_s13, [#allocation3]  }
 0x328   :  { %v1265_v29 = vpop.f32.mrf.mxu2 }
 0x329   :  { %v1278_v32 = vpop.f32.mrf.mxu3 }
 0x32a   :  { %1430 = dma.done.wait [#allocation3], 512  }
 0x32b   :  { %1431 = vsyncadd [#allocation3], 4294966784 }
 0x32c   :  { %1299 = vsyncpa [#allocation3], 1 }

</bundles_post_ra>
